<compile_context>
chip_gen: v5e
topology: v5e:2x2
jax: 0.10.0
libtpu: 0.0.40
codegen_flags: <defaults>
</compile_context>

<pallas_src>
import functools
import math

import numpy as np
import jax
import jax.numpy as jnp
from jax import lax
from jax.experimental import pallas as pl
from jax.experimental.pallas import tpu as pltpu


# ----------------------------- nearest-upsample path -----------------------------
def _relu_1x1_kernel(x_ref, w_ref, b_ref, o_ref):
    # x_ref: (1, Cin, st)   w_ref: (Cout, Cin)   b_ref: (Cout, 1)   o_ref: (1, Cout, st)
    x = jnp.maximum(x_ref[0], 0.0)
    o_ref[0] = jnp.dot(w_ref[...], x, preferred_element_type=jnp.float32) + b_ref[...]


def _pick_spatial_tile(HW, C, Cout, N, target_block_bytes):
    """Largest lane tile (multiple of 128 dividing HW) sized by (x+out) block bytes."""
    if HW % 128 != 0:
        return HW                                   # full-extent lane block (always legal)
    cap = (target_block_bytes // ((C + Cout) * 4)) // 128 * 128
    cap = max(128, min(HW, cap))
    st = 128
    for cand in range(128, cap + 1, 128):
        if HW % cand == 0:
            st = cand
    if N == 1 and st == HW and HW % 256 == 0:       # keep >=2 grid steps for v7x megacore
        st = HW // 2
    return st


def up_nearest(x_nchw, w_oc, b, *, target_block_bytes=2 << 20):
    """F.interpolate(x, 2, 'nearest') -> ReLU -> Conv2d(in,out,1,bias).  w_oc: (Cout, Cin)."""
    N, C, H, W = x_nchw.shape
    Cout = w_oc.shape[0]
    HW = H * W
    x3 = x_nchw.reshape(N, C, HW)                   # metadata-only reshape (stays NCHW)
    st = _pick_spatial_tile(HW, C, Cout, N, target_block_bytes)

    out = pl.pallas_call(
        _relu_1x1_kernel,
        out_shape=jax.ShapeDtypeStruct((N, Cout, HW), jnp.float32),
        grid=(N, HW // st),
        in_specs=[pl.BlockSpec((1, C, st), lambda n, s: (n, 0, s)),
                  pl.BlockSpec((Cout, C), lambda n, s: (0, 0)),
                  pl.BlockSpec((Cout, 1), lambda n, s: (0, 0))],
        out_specs=pl.BlockSpec((1, Cout, st), lambda n, s: (n, 0, s)),
        compiler_params=pltpu.CompilerParams(
            dimension_semantics=("parallel", "parallel")),
    )(x3, w_oc, b.reshape(Cout, 1))

    y = out.reshape(N, Cout, H, W)
    # nearest x2 replication of the small conv output (single XLA broadcast pass)
    y = jnp.broadcast_to(y[:, :, :, None, :, None], (N, Cout, H, 2, W, 2))
    return y.reshape(N, Cout, 2 * H, 2 * W)         # NCHW


# --------------------------------- convT path -------------------------------------
_PAD_ROWS = 8   # scratch tail pad so the (W+1)-shifted view never reads past the buffer


def _up_convT_kernel(x_ref, halo_ref, wb_ref, o_ref, rbuf, *, W, H):
    # x_ref:    (tm, Cin)          rows = (n, h, w); tm is a multiple of W
    # halo_ref: (1, W, Cin)        the W rows following this block (zeros for last block)
    # wb_ref:   (4, Cin, 4*Cout)   depthwise taps folded into the pointwise weight
    # o_ref:    (tm, 4*Cout)       lane-packed quadrants q = 2*(row parity) + (col parity)
    tm, C = x_ref.shape
    i = pl.program_id(0)

    # Stage the ReLU'd block plus its halo row contiguously in VMEM scratch so the
    # shifted-neighbour views are plain offset loads (no concatenate/shift copies).
    # The tiny tail pad is written every step on purpose: scratch is per-core and
    # program_id==0 may never run on the second TC when the grid is megacore-split.
    rbuf[pl.ds(0, tm), :] = jnp.maximum(x_ref[...], 0.0)
    rbuf[pl.ds(tm, W), :] = jnp.maximum(halo_ref[0], 0.0)
    rbuf[pl.ds(tm + W, _PAD_ROWS), :] = jnp.zeros((_PAD_ROWS, C), jnp.float32)

    # Boundary masks built in-kernel from iota (no HBM mask inputs / DMA pipelines).
    ridx = lax.broadcasted_iota(jnp.int32, (tm, 1), 0)
    col = ridx % W
    row = (i * (tm // W) + ridx // W) % H
    mj = (col < W - 1).astype(jnp.float32)          # right neighbour exists
    md = (row < H - 1).astype(jnp.float32)          # down  neighbour exists

    r    = rbuf[pl.ds(0, tm), :]                    # x[h,   j  ]
    r_r  = rbuf[pl.ds(1, tm), :] * mj               # x[h,   j+1]
    r_d  = rbuf[pl.ds(W, tm), :] * md               # x[h+1, j  ]
    r_dr = rbuf[pl.ds(W + 1, tm), :] * (mj * md)    # x[h+1, j+1]

    # Four accumulating MXU matmuls (no (tm, 4*Cin) lane-concat temp).
    acc = jnp.dot(r, wb_ref[0], preferred_element_type=jnp.float32)
    acc = acc + jnp.dot(r_r, wb_ref[1], preferred_element_type=jnp.float32)
    acc = acc + jnp.dot(r_d, wb_ref[2], preferred_element_type=jnp.float32)
    acc = acc + jnp.dot(r_dr, wb_ref[3], preferred_element_type=jnp.float32)
    o_ref[...] = acc


def _fold_convT_weights(wdw_pt, w1):
    """Fold the 3x3 depthwise ConvT taps into the 1x1 pointwise weight.

    Returns (4, Cin, 4*Cout): leading axis = shifted input [center, right, down,
    down-right]; column blocks = output quadrants [ee, eo, oe, oo] with
    q = 2*row_parity + col_parity.
    """
    C, Cout = w1.shape
    w = wdw_pt.reshape(C, 3, 3)
    z = jnp.zeros((C, Cout), w1.dtype)

    def tap(kh, kw):
        return w[:, kh, kw][:, None] * w1

    row_c  = jnp.concatenate([tap(1, 1), tap(1, 2), tap(2, 1), tap(2, 2)], axis=1)
    row_r  = jnp.concatenate([z,         tap(1, 0), z,         tap(2, 0)], axis=1)
    row_d  = jnp.concatenate([z,         z,         tap(0, 1), tap(0, 2)], axis=1)
    row_dr = jnp.concatenate([z,         z,         z,         tap(0, 0)], axis=1)
    return jnp.stack([row_c, row_r, row_d, row_dr], axis=0)


def _pick_convT_rows(N, H, W, C, Cout, *, target_block_bytes, min_grid=2):
    """Row tile tm = k*W (8-row aligned), sized by the (x + lane-packed out) block bytes."""
    rows_total = N * H
    bytes_per_image_row = W * (C + 4 * Cout) * 4
    a = 8 // math.gcd(W, 8)                         # k must be a multiple of a for tm % 8 == 0
    k_cap = max(1, target_block_bytes // bytes_per_image_row)
    if rows_total >= min_grid * a:
        k_cap = min(k_cap, rows_total // min_grid)  # keep >=2 grid steps (v7x megacore)
    k_cap = max(a, (k_cap // a) * a)
    k_div = 0
    for k in range(a, k_cap + 1, a):                # prefer a divisor of N*H (no padding copy)
        if rows_total % k == 0:
            k_div = k
    if k_div > 0 and 2 * k_div >= k_cap:
        return k_div * W
    return k_cap * W                                # non-divisor: wrapper zero-pads rows


def up_convT(x_nchw, wdw_pt, w1, *, target_block_bytes=2 << 20):
    """ReLU -> depthwise ConvTranspose2d(3,s2,p1,op1,groups=in) -> Conv2d(in,out,1).  w1: (Cin,Cout)."""
    N, C, H, W = x_nchw.shape
    Cout = w1.shape[1]
    # TODO(synk): a channels-last module boundary would remove this transpose pass.
    x2d = jnp.transpose(x_nchw, (0, 2, 3, 1)).reshape(-1, C)          # (M, Cin)
    M = x2d.shape[0]

    tm = _pick_convT_rows(N, H, W, C, Cout, target_block_bytes=target_block_bytes)
    nb = (M + tm - 1) // tm
    Mp = nb * tm
    if Mp != M:                                     # bounded zero-pad, never one giant VMEM block
        x2d = jnp.pad(x2d, ((0, Mp - M), (0, 0)))

    # halo[b] = the W rows following block b (zeros for the last block); down-neighbour
    # validity across image bottoms is handled in-kernel by the row mask, not the halo.
    firsts = x2d.reshape(nb, tm // W, W, C)[:, 0]                     # (nb, W, C)
    halo = jnp.concatenate([firsts[1:], jnp.zeros((1, W, C), x2d.dtype)], axis=0)

    wb = _fold_convT_weights(wdw_pt, w1)                              # (4, Cin, 4*Cout)

    out = pl.pallas_call(
        functools.partial(_up_convT_kernel, W=W, H=H),
        out_shape=jax.ShapeDtypeStruct((Mp, 4 * Cout), jnp.float32),
        grid=(nb,),
        in_specs=[pl.BlockSpec((tm, C), lambda i: (i, 0)),
                  pl.BlockSpec((1, W, C), lambda i: (i, 0, 0)),
                  pl.BlockSpec((4, C, 4 * Cout), lambda i: (0, 0, 0))],
        out_specs=pl.BlockSpec((tm, 4 * Cout), lambda i: (i, 0)),
        scratch_shapes=[pltpu.VMEM((tm + W + _PAD_ROWS, C), jnp.float32)],
        compiler_params=pltpu.CompilerParams(dimension_semantics=("parallel",)),
    )(x2d, halo, wb)

    if Mp != M:
        out = out[:M]
    # quadrant reassembly (pure data movement on the already lane-packed output):
    # y[n, co, 2i+a, 2j+b] = out[(n,i,j), (2a+b)*Cout + co]
    y = out.reshape(N, H, W, 2, 2, Cout)
    y = jnp.transpose(y, (0, 5, 1, 3, 2, 4))
    return y.reshape(N, Cout, 2 * H, 2 * W)                           # NCHW


# --------------------------------- references --------------------------------------
def ref_up_nearest(x, w_oc, b):
    up = np.repeat(np.repeat(x, 2, axis=2), 2, axis=3)
    r = np.maximum(up, 0.0)
    return np.einsum("oc,nchw->nohw", np.asarray(w_oc), r) + np.asarray(b)[None, :, None, None]


def ref_up_convT(x, wdw_pt, w1):
    N, C, H, W = x.shape
    r = np.maximum(x, 0.0)
    dw = np.zeros((N, C, 2 * H, 2 * W), np.float32)
    for kh in range(3):
        for kw in range(3):
            for ih in range(H):
                oh = 2 * ih - 1 + kh
                if not (0 <= oh < 2 * H):
                    continue
                for iw in range(W):
                    ow = 2 * iw - 1 + kw
                    if not (0 <= ow < 2 * W):
                        continue
                    dw[:, :, oh, ow] += r[:, :, ih, iw] * wdw_pt[None, :, 0, kh, kw]
    return np.einsum("oc,nchw->nohw", np.asarray(w1).T, dw)


if __name__ == "__main__":
    key = jax.random.PRNGKey(0)
    ks = jax.random.split(key, 6)
    N, Cin, Cout, H, W = 2, 4, 8, 16, 16
    x = jax.random.normal(ks[0], (N, Cin, H, W), jnp.float32)

    # mode != 'convT': Conv2d(in_ch, out_ch, 1) parameters (weight + bias)
    w_near_pt = 0.3 * jax.random.normal(ks[1], (Cout, Cin, 1, 1), jnp.float32)
    b_near = 0.1 * jax.random.normal(ks[2], (Cout,), jnp.float32)
    w_near = w_near_pt[:, :, 0, 0]                                    # (Cout, Cin)

    # mode == 'convT': ConvTranspose2d(in,in,3,groups=in) weight (in,1,3,3), 1x1 conv no-bias
    w_dw_pt = 0.3 * jax.random.normal(ks[3], (Cin, 1, 3, 3), jnp.float32)
    w_pw_pt = 0.3 * jax.random.normal(ks[4], (Cout, Cin, 1, 1), jnp.float32)
    w_pw = jnp.transpose(w_pw_pt[:, :, 0, 0], (1, 0))                 # (Cin, Cout)

    x_np = np.asarray(x)
    ref_near = ref_up_nearest(x_np, np.asarray(w_near), np.asarray(b_near))
    ref_ct = ref_up_convT(x_np, np.asarray(w_dw_pt), np.asarray(w_pw))

    # default (byte-sized) tiles
    y_near = jax.block_until_ready(up_nearest(x, w_near, b_near))
    y_convT = jax.block_until_ready(up_convT(x, w_dw_pt, w_pw))
    # small-tile configs exercising multi-block grids and the halo path
    y_near_t = jax.block_until_ready(up_nearest(x, w_near, b_near, target_block_bytes=8192))
    y_convT_t = jax.block_until_ready(up_convT(x, w_dw_pt, w_pw, target_block_bytes=16 * 1024))

    np.testing.assert_allclose(np.asarray(y_near), ref_near, rtol=1e-5, atol=1e-5)
    np.testing.assert_allclose(np.asarray(y_near_t), ref_near, rtol=1e-5, atol=1e-5)
    np.testing.assert_allclose(np.asarray(y_convT), ref_ct, rtol=1e-5, atol=1e-5)
    np.testing.assert_allclose(np.asarray(y_convT_t), ref_ct, rtol=1e-5, atol=1e-5)

    # awkward shape: HW not a multiple of 128 (nearest full-extent lane block) and
    # N*H with no nice tile divisor (convT row-padding path instead of a giant block)
    x_odd = jax.random.normal(ks[5], (1, Cin, 7, 8), jnp.float32)
    ref_near_odd = ref_up_nearest(np.asarray(x_odd), np.asarray(w_near), np.asarray(b_near))
    ref_ct_odd = ref_up_convT(np.asarray(x_odd), np.asarray(w_dw_pt), np.asarray(w_pw))
    y_near_odd = jax.block_until_ready(up_nearest(x_odd, w_near, b_near))
    y_convT_odd = jax.block_until_ready(up_convT(x_odd, w_dw_pt, w_pw, target_block_bytes=4096))
    np.testing.assert_allclose(np.asarray(y_near_odd), ref_near_odd, rtol=1e-5, atol=1e-5)
    np.testing.assert_allclose(np.asarray(y_convT_odd), ref_ct_odd, rtol=1e-5, atol=1e-5)

    assert y_near.shape == (N, Cout, 2 * H, 2 * W)
    assert y_convT.shape == (N, Cout, 2 * H, 2 * W)
    print("KERNEL_OK")
</pallas_src>

<mosaic_0001>
module attributes {stable_mosaic.version = 11 : i64} {
  func.func @_relu_1x1_kernel(%arg0: i32, %arg1: i32, %arg2: memref<1x4x256xf32, #tpu.memory_space<vmem>>, %arg3: memref<8x4xf32, #tpu.memory_space<vmem>>, %arg4: memref<8x1xf32, #tpu.memory_space<vmem>>, %arg5: memref<1x8x256xf32, #tpu.memory_space<vmem>>) attributes {dimension_semantics = [#tpu.dimension_semantics<parallel>, #tpu.dimension_semantics<parallel>], iteration_bounds = array<i64: 2, 1>, scalar_prefetch = 0 : i64, scratch_operands = 0 : i64, tpu.core_type = #tpu.core_type<tc>, window_params = [{transform_indices = @transform_0, window_bounds = array<i64: 1, 4, 256>}, {pipeline_mode = #tpu.pipeline_mode<synchronous>, transform_indices = @transform_1, window_bounds = array<i64: 8, 4>}, {pipeline_mode = #tpu.pipeline_mode<synchronous>, transform_indices = @transform_2, window_bounds = array<i64: 8, 1>}, {transform_indices = @transform_3, window_bounds = array<i64: 1, 8, 256>}]} {
    %c0 = arith.constant 0 : index
    %c0_0 = arith.constant 0 : index
    %c0_1 = arith.constant 0 : index
    %0 = vector.load %arg2[%c0, %c0_0, %c0_1] : memref<1x4x256xf32, #tpu.memory_space<vmem>>, vector<1x4x256xf32>
    %1 = vector.shape_cast %0 : vector<1x4x256xf32> to vector<4x256xf32>
    %cst = arith.constant 0.000000e+00 : f32
    %2 = vector.broadcast %cst : f32 to vector<4x256xf32>
    %3 = arith.maximumf %1, %2 : vector<4x256xf32>
    %c0_2 = arith.constant 0 : index
    %c0_3 = arith.constant 0 : index
    %4 = vector.load %arg3[%c0_2, %c0_3] : memref<8x4xf32, #tpu.memory_space<vmem>>, vector<8x4xf32>
    %cst_4 = arith.constant dense<0.000000e+00> : vector<8x256xf32>
    %5 = tpu.matmul %4, %3, %cst_4 {dimension_numbers = #tpu.dot_dimension_numbers<[1], [0], [0], [1], [0, 0, 1, 1], [], []>} : vector<8x4xf32>, vector<4x256xf32>, vector<8x256xf32> -> vector<8x256xf32>
    %c0_5 = arith.constant 0 : index
    %c0_6 = arith.constant 0 : index
    %6 = vector.load %arg4[%c0_5, %c0_6] : memref<8x1xf32, #tpu.memory_space<vmem>>, vector<8x1xf32>
    %7 = vector.broadcast %6 : vector<8x1xf32> to vector<8x256xf32>
    %8 = arith.addf %5, %7 : vector<8x256xf32>
    %c0_7 = arith.constant 0 : index
    %c0_8 = arith.constant 0 : index
    %c0_9 = arith.constant 0 : index
    %9 = vector.load %arg5[%c0_7, %c0_8, %c0_9] : memref<1x8x256xf32, #tpu.memory_space<vmem>>, vector<1x8x256xf32>
    %10 = vector.shape_cast %9 : vector<1x8x256xf32> to vector<8x256xf32>
    %11 = vector.shape_cast %8 : vector<8x256xf32> to vector<1x8x256xf32>
    tpu.vector_store %arg5[%c0_7, %c0_8, %c0_9], %11 {strides = array<i32>} : memref<1x8x256xf32, #tpu.memory_space<vmem>>, vector<1x8x256xf32>,
    return
  }
  func.func @transform_0(%arg0: i32, %arg1: i32) -> (i32, i32, i32) {
    %c0_i32 = arith.constant 0 : i32
    %c0_i32_0 = arith.constant 0 : i32
    return %arg0, %c0_i32, %arg1 : i32, i32, i32
  }
  func.func @transform_1(%arg0: i32, %arg1: i32) -> (i32, i32) {
    %c0_i32 = arith.constant 0 : i32
    %c0_i32_0 = arith.constant 0 : i32
    %c0_i32_1 = arith.constant 0 : i32
    return %c0_i32, %c0_i32_0 : i32, i32
  }
  func.func @transform_2(%arg0: i32, %arg1: i32) -> (i32, i32) {
    %c0_i32 = arith.constant 0 : i32
    %c0_i32_0 = arith.constant 0 : i32
    %c0_i32_1 = arith.constant 0 : i32
    return %c0_i32, %c0_i32_0 : i32, i32
  }
  func.func @transform_3(%arg0: i32, %arg1: i32) -> (i32, i32, i32) {
    %c0_i32 = arith.constant 0 : i32
    %c0_i32_0 = arith.constant 0 : i32
    return %arg0, %c0_i32, %arg1 : i32, i32, i32
  }
}

</mosaic_0001>

<bundles_post_ra>
// kernel: tpu_custom_call.1
= control target key start
LH: loop header
LB: loop body
LE: loop exit
PB: predicated region body
PF: predicated region fallthrough
CT: control target
= control target key end

     0   :  { %8 = vsyncpa [#allocation3], 0  ;;  %s639_s0 = inlined_call_operand.vmem [shape: f32[2,4,256], index: 0, kind: input, shape index: {}]   ;;  %s640_s1 = inlined_call_operand.vmem [shape: f32[8,4], index: 1, kind: input, shape index: {}]   ;;  %s641_s2 = inlined_call_operand.vmem [shape: f32[8,1], index: 2, kind: input, shape index: {}]   ;;  %s642_s3 = inlined_call_operand.hbm [shape: f32[2,8,256], index: 3, kind: output, shape index: {}]  }
   0x1   :  { %10 = vsyncpa [#allocation3 + $0x1], 0  ;;  %s536_s12 = smov 0   ;;  %s538_s13 = smov 0  }
   0x2   :  { %s540_s14 = smov 0   ;;  %s542_s15 = smov 0  }
   0x3   :  { %s544_s16 = smov 0   ;;  %s546_s17 = smov 0  }
   0x4 LB: > { %s359_s18 = sadd.s32 4294967295, %s513_s17   ;;  %s360_s19 = sadd.s32 4294967294, %s513_s17   ;;  %s513_s17 = sphi %s546_s17, %s16_s17   ;;  %s509_s16 = sphi %s544_s16, %s649_s16   ;;  %s505_s15 = sphi %s542_s15, %s648_s15   ;;  %s501_s14 = sphi %s540_s14, %s647_s14   ;;  %s497_s13 = sphi %s538_s13, %s646_s13   ;;  %s493_s12 = sphi %s536_s12, %s645_s12  }
   0x5   : > { %s28_s20 = sadd.s32 1, %s509_s16  ;;  %s107_s21 = sadd.s32 1, %s501_s14 }
   0x6   : > { %p30_p0 = scmp.ge.s32.totalorder %s28_s20, 2  ;;  %p117_p1 = scmp.ne.s32.totalorder %s501_s14, %s497_s13 }
   0x7   : > { %p118_p2 = scmp.eq.s32.totalorder %s359_s18, 1  ;;  %p123_p3 = scmp.ne.s32.totalorder %s497_s13, %s493_s12 }
   0x8   : > { %s651_s20 = smov (%p30_p0, %s28_s20), 0  ;;  %p124_p5 = scmp.eq.s32.totalorder %s360_s19, 1 }
   0x9   : > { %p576_p4 = por %p118_p2, %p117_p1  ;;  %s102_s23 = ssub.s32 %s509_s16, %s651_s20 }
   0xa   : > { %p363_p6 = scmp.ge.s32.totalorder %s513_s17, 1  ;;  %p105_p7 = scmp.eq.s32.totalorder %s102_s23, 0 }
   0xb   : > { %p583_p8 = por %p124_p5, %p123_p3  ;;  %p161_p9 = scmp.lt.s32.totalorder %s513_s17, 3 }
   0xc   : > { %s589_s25 = scalar_select %p105_p7, %s501_s14, %s107_s21  }
   0xd   : > { %p162_p10 = pnand %p363_p6, %p161_p9 }
   0xe   : > { %p190_p11 = scmp.lt.s32.totalorder (!%p162_p10), %s505_s15, 1  ;;  %s186_s8 = sand.u32 (!%p162_p10), 1, %s497_s13  }
   0xf   : > { %165 = sbr.rel (%p162_p10) target bundleno = 168 (0xa8), region = 32  ;;  %s364_s9 = sshll.u32 (!%p162_p10), %s186_s8, 4 }
  0x10   : > { %s377_s10 = sshll.u32 (!%p162_p10), %s505_s15, 4  ;;  %s188_s21 = scalar_lea.vmem (!%p162_p10), [#allocation2], %s364_s9 }
  0x11   : > { %s278_s19 = scalar_lea.hbm (!%p162_p10), %s642_s3, %s377_s10  ;;  %s280_s23 = sshll.u32 (!%p162_p10), %s188_s21, 4  ;;  %s281_s23 = int_to_ptr.vmem [resolvable:$true] %s280_s23 }
  0x12   : > { %s282_s26 = sshll.u32 (!%p162_p10), %s278_s19, 4  ;;  %s265_s27 = scalar_lea.sflag (!%p162_p10), [#allocation3], %s186_s8  ;;  %s283_s26 = int_to_ptr.hbm [resolvable:$true] %s282_s26 }
  0x13   : > { %s455_s4 = scalar_lea.hbm (!%p162_p10), %s642_s3, 32 }
  0x14   : > { %v203_v0 = vld [vmem:[%s641_s2] sm:$0xff]  ;;  %v515_v1 = vmov 0   ;;  %s191_s28 = scalar_select %p190_p11, %s505_s15, 1  ;;  %vm217_vm0 = vcmask 1043456   ;;  %vm213_vm1 = vcmask 31744  }
  0x15   : > { %434 = vset.pattern.permute.xlu0 %v515_v1  ;;  %v202_v4 = vld [vmem:[%s640_s1] sm:$0xff] }
  0x16   : > { %206 = vperm.xlu0 %434, %v203_v0   ;;  %s376_s29 = sshll.u32 %s191_s28, 3  ;;  %s449_s28 = sshra.s32 %s283_s26, 4  ;;  %s450_s28 = int_to_ptr.hbm [resolvable:$true] %s449_s28 }
  0x17   : > { %s197_s5 = scalar_lea.vmem %s639_s0, %s376_s29  ;;  %s451_s15 = scalar_lea.hbm %s450_s28, 16 }
  0x18   : > { %v200_v2 = vld [vmem:[%s197_s5] sm:$0xff]  ;;  %p452_p12 = scmp.ne.s32.totalorder %s450_s28, %s451_s15  ;;  %p456_p1 = scmp.lt.s32.totalorder %s450_s28, %s642_s3 }
  0x19   : > { %v201_v3 = vmax.f32 %v200_v2, 0.0  ;;  %p457_p2 = scmp.lt.s32.totalorder %s455_s4, %s451_s15 }
  0x1a   : > { %p453_p13 = pnand %p452_p12, %p576_p4 }
  0x1b   : > { %210 = vst [vmem:[#allocation1] ss:$2 sm:$0xff] %v201_v3  ;;  %p458_p3 = por %p457_p2, %p456_p1 }
  0x1c   : > { %p454_p0 = pneg %p453_p13 }
  0x1e   : > { %p459_p5 = pnand %p458_p3, %p454_p0 }
  0x22   : > { %v211_v5 = vld.sshfl [vmem:[#allocation1] sm:$0xff pattern:$0x75316420]  ;;  %v212_v6 = vld.sshfl [vmem:[#allocation1 + $0x8] sm:$0xff pattern:$0x75316420] }
  0x23   : > { %367 = vmatpush.msk.msra.mxu0 %vm217_vm0, %v211_v5  ;;  %369 = vmatpush.msk.msra.mxu1 %vm217_vm0, %v212_v6 }
  0x24   : > { %368 = vmatmul.msk.f32.vlgmr.msra.gmra.mxu0 %vm213_vm1, %v202_v4  ;;  %370 = vmatmul.msk.f32.vlgmr.msra.gmra.mxu1 %vm213_vm1, %v202_v4 }
  0x88   : > { %v207_v7 = vpop.permute.xlu0 %206 }
  0xa1   : > { %v239_v8 = vpop.f32.mrf.mxu0  ;;  %v259_v9 = vpop.f32.mrf.mxu1 }
  0xa2   : > { %v240_v10 = vadd.f32 %v239_v8, %v207_v7  ;;  %v260_v11 = vadd.f32 %v259_v9, %v207_v7 }
  0xa4   : > { %262 = vst [vmem:[%s188_s21] sm:$0xff] %v240_v10 }
  0xa5   : > { %263 = vst [vmem:[%s188_s21 + $0x8] sm:$0xff] %v260_v11 }
  0xa6   : > { %462 = shalt.err (!%p459_p5)
}
  0xa7   : > { %378 = dma.vmem_to_hbm [thread:$0]  (%p576_p4), %s281_s23, 256, %s283_s26, %s265_s27  }
  0xa8 PF: > { %p384_p6 = scmp.ge.s32.totalorder %s513_s17, 2  ;;  %s294_s7 = sand.u32 1, %s493_s12  }
  0xa9   : > { %s295_s8 = scalar_lea.sflag [#allocation3], %s294_s7 }
  0xaa   : > { %p381_p7 = pnand %p384_p6, %p583_p8 }
  0xac   : > { %p382_p9 = pneg %p381_p7 }
  0xae   : > { %488 = dma.done.wait (%p382_p9), %s295_s8, 256  }
  0xaf   : > { %490 = vsyncadd (%p382_p9), %s295_s8, 4294967040  ;;  %s16_s17 = sadd.s32 1, %s513_s17   ;;  %s645_s12 = smov %s497_s13 }
  0xb0   : > { %p13_p10 = scmp.ge.s32.totalorder %s16_s17, 4   ;;  %s646_s13 = smov %s501_s14 }
  0xb1   : > { %s647_s14 = smov %s589_s25  ;;  %s648_s15 = smov %s509_s16 }
  0xb2   : > { %s649_s16 = smov %s651_s20  ;;  %15 = sbr.rel (!%p13_p10) target bundleno = 4 (0x4), region = 67 }
  0xb7   :  { %301 = vsyncpa [#allocation3], 1 }
  0xb8   :  { %303 = vsyncpa [#allocation3 + $0x1], 1 }

</bundles_post_ra>
